<compile_context>
chip_gen: v6e
topology: v6e:2x2x1
jax: 0.10.0
libtpu: 0.0.40
codegen_flags: <defaults>
</compile_context>

<pallas_src>
import math

import jax
import jax.numpy as jnp
from jax.experimental import pallas as pl
from jax.experimental.pallas import tpu as pltpu


def _ftl_kernel(x_ref, a_ref, b_ref, o_ref):
    # x: (tm, tf) tile; a/b: (1, tf) per-feature affine vectors, broadcast over
    # rows.  a/b stay f32; the FMA promotes bf16 x to f32 and downcasts once.
    o_ref[...] = (a_ref[...] * x_ref[...] + b_ref[...]).astype(o_ref.dtype)


def _round_up(v, m):
    return ((v + m - 1) // m) * m


def feature_wise_transformation(x, gamma, beta, eps_g, eps_b):
    """x: (..., F); gamma/beta/eps_g/eps_b: (F,).  Returns same shape/dtype as x."""
    orig_shape = x.shape
    F = orig_shape[-1]
    out_dtype = x.dtype
    x2 = x.reshape(-1, F)
    N = x2.shape[0]

    # --- per-feature affine vectors (rsample decomposition: loc + scale*eps) --
    sig_g = jax.nn.softplus(gamma.astype(jnp.float32))
    sig_b = jax.nn.softplus(beta.astype(jnp.float32))
    a = 1.0 + sig_g * eps_g.astype(jnp.float32)          # (F,)
    b = sig_b * eps_b.astype(jnp.float32)                 # (F,)

    # --- lane-dense folding (always taken) ------------------------------------
    # Fold `fold` consecutive rows into one row of width fold*F (multiple of
    # 128) and tile a/b accordingly.  If N is not a multiple of `fold`, pad
    # rows with zeros and slice the result, so the unmasked-vst path is always
    # used (masked partial stores are the single largest measured lever).
    fold = 1
    if F % 128 != 0:
        fold = 128 // math.gcd(F, 128)
    Np = _round_up(max(N, 1), fold)
    if Np != N:
        x2 = jnp.pad(x2, ((0, Np - N), (0, 0)))
    Nw, Fw = Np // fold, F * fold
    xw = x2.reshape(Nw, Fw)
    aw = jnp.tile(a, fold).reshape(1, Fw)
    bw = jnp.tile(b, fold).reshape(1, Fw)

    itemsize = jnp.dtype(out_dtype).itemsize
    sub = max(8, 32 // itemsize)          # sublane tile: 8 f32, 16 bf16, 32 int8

    # --- generation-aware VMEM budget ------------------------------------------
    # v5e / v6e expose 128 MiB physical VMEM per TensorCore; v7x only 64 MiB.
    try:
        vmem_phys = int(pltpu.get_tpu_info().vmem_capacity_bytes)
    except Exception:
        vmem_phys = 64 * 1024 * 1024      # conservative (v7x-sized) fallback
    if vmem_phys >= 100 * 1024 * 1024:    # v5e / v6e
        pipeline_budget = 48 * 1024 * 1024
    else:                                 # v7x
        pipeline_budget = 28 * 1024 * 1024
    # 2 streams (x in, out) x 2 pipeline buffers share the budget.
    per_block_budget = pipeline_budget // 4
    vmem_limit = min(vmem_phys - 8 * 1024 * 1024,
                     pipeline_budget + 16 * 1024 * 1024)

    # --- tile selection ---------------------------------------------------------
    if Fw * itemsize * sub <= per_block_budget:
        tf = Fw                                            # full-width rows
    else:
        # very wide feature dim: tile F in multiples of 128 (still lane-dense)
        tf = max(128, (per_block_budget // (sub * itemsize)) // 128 * 128)
        tf = min(tf, Fw)

    tm = max(sub, per_block_budget // (tf * itemsize))
    tm = min(tm, Nw)
    # Guarantee >= 2 grid steps (when rows allow) so megacore chips (v7x) can
    # shard the stream across both TensorCores; extra step is ~0.35us elsewhere.
    if tf == Fw and Nw >= 2 * sub:
        tm = min(tm, _round_up(pl.cdiv(Nw, 2), sub))
    if tm >= sub:
        tm = (tm // sub) * sub                             # sublane/packing aligned
    else:
        tm = Nw                                            # tiny input: one block

    grid = (pl.cdiv(Nw, tm), pl.cdiv(Fw, tf))

    cost = pl.CostEstimate(
        flops=2 * Nw * Fw,
        transcendentals=0,
        bytes_accessed=2 * Nw * Fw * itemsize + 2 * Fw * 4,
    )

    out = pl.pallas_call(
        _ftl_kernel,
        out_shape=jax.ShapeDtypeStruct((Nw, Fw), out_dtype),
        grid_spec=pl.GridSpec(
            grid=grid,
            in_specs=[
                pl.BlockSpec((tm, tf), lambda i, j: (i, j)),   # x tile (streamed)
                pl.BlockSpec((1, tf), lambda i, j: (0, j)),    # a (tiny, resident)
                pl.BlockSpec((1, tf), lambda i, j: (0, j)),    # b (tiny, resident)
            ],
            out_specs=pl.BlockSpec((tm, tf), lambda i, j: (i, j)),
        ),
        compiler_params=pltpu.CompilerParams(
            dimension_semantics=("parallel", "parallel"),
            vmem_limit_bytes=vmem_limit,
        ),
        cost_estimate=cost,
        # TODO(synk): expose input_output_aliases={0: 0} when the caller can
        #             donate x (in-place write; saves one HBM allocation).
    )(xw, aw, bw)

    out = out.reshape(Np, F)
    if Np != N:
        out = out[:N]
    return out.reshape(orig_shape)


def _reference(x, gamma, beta, eps_g, eps_b):
    sig_g = jax.nn.softplus(gamma.astype(jnp.float32))
    sig_b = jax.nn.softplus(beta.astype(jnp.float32))
    a = (1.0 + sig_g * eps_g)[None, :]
    b = (sig_b * eps_b)[None, :]
    flat = x.reshape(-1, x.shape[-1]).astype(jnp.float32)
    return (a * flat + b).astype(x.dtype).reshape(x.shape)


if __name__ == "__main__":
    key = jax.random.PRNGKey(0)
    k_x, k_g, k_b, k_x2 = jax.random.split(key, 4)

    # ---- primary case: matches the module's usage (size = feature dim) ------
    N, F = 64, 32
    x = jax.random.normal(k_x, (N, F), dtype=jnp.float32)
    gamma = jnp.zeros((F,), dtype=jnp.float32)   # nn.Parameter(torch.zeros(size))
    beta = jnp.zeros((F,), dtype=jnp.float32)
    eps_g = jax.random.normal(k_g, (F,), dtype=jnp.float32)   # rsample noise
    eps_b = jax.random.normal(k_b, (F,), dtype=jnp.float32)

    out = jax.block_until_ready(feature_wise_transformation(x, gamma, beta, eps_g, eps_b))
    ref = _reference(x, gamma, beta, eps_g, eps_b)
    assert out.shape == x.shape and out.dtype == x.dtype
    assert jnp.allclose(out, ref, atol=1e-5, rtol=1e-5)

    # ---- secondary case: awkward shapes exercising the pad-to-fold path -----
    N2, F2 = 7, 10
    x2 = jax.random.normal(k_x2, (N2, F2), dtype=jnp.float32)
    g2 = jnp.zeros((F2,), dtype=jnp.float32)
    b2 = jnp.zeros((F2,), dtype=jnp.float32)
    eg2 = jax.random.normal(k_g, (F2,), dtype=jnp.float32)
    eb2 = jax.random.normal(k_b, (F2,), dtype=jnp.float32)
    out2 = jax.block_until_ready(feature_wise_transformation(x2, g2, b2, eg2, eb2))
    ref2 = _reference(x2, g2, b2, eg2, eb2)
    assert out2.shape == x2.shape
    assert jnp.allclose(out2, ref2, atol=1e-5, rtol=1e-5)

    print("KERNEL_OK")
</pallas_src>

<mosaic_0001>
module attributes {stable_mosaic.version = 11 : i64} {
  func.func @_ftl_kernel(%arg0: i32, %arg1: i32, %arg2: memref<8x128xf32, #tpu.memory_space<vmem>>, %arg3: memref<1x128xf32, #tpu.memory_space<vmem>>, %arg4: memref<1x128xf32, #tpu.memory_space<vmem>>, %arg5: memref<8x128xf32, #tpu.memory_space<vmem>>) attributes {dimension_semantics = [#tpu.dimension_semantics<parallel>, #tpu.dimension_semantics<parallel>], iteration_bounds = array<i64: 2, 1>, scalar_prefetch = 0 : i64, scratch_operands = 0 : i64, tpu.core_type = #tpu.core_type<tc>, window_params = [{transform_indices = @transform_0, window_bounds = array<i64: 8, 128>}, {transform_indices = @transform_1, window_bounds = array<i64: 1, 128>}, {transform_indices = @transform_2, window_bounds = array<i64: 1, 128>}, {transform_indices = @transform_3, window_bounds = array<i64: 8, 128>}]} {
    %c0 = arith.constant 0 : index
    %c0_0 = arith.constant 0 : index
    %0 = vector.load %arg3[%c0, %c0_0] : memref<1x128xf32, #tpu.memory_space<vmem>>, vector<1x128xf32>
    %c0_1 = arith.constant 0 : index
    %c0_2 = arith.constant 0 : index
    %1 = vector.load %arg2[%c0_1, %c0_2] : memref<8x128xf32, #tpu.memory_space<vmem>>, vector<8x128xf32>
    %2 = vector.broadcast %0 : vector<1x128xf32> to vector<8x128xf32>
    %3 = arith.mulf %2, %1 : vector<8x128xf32>
    %c0_3 = arith.constant 0 : index
    %c0_4 = arith.constant 0 : index
    %4 = vector.load %arg4[%c0_3, %c0_4] : memref<1x128xf32, #tpu.memory_space<vmem>>, vector<1x128xf32>
    %5 = vector.broadcast %4 : vector<1x128xf32> to vector<8x128xf32>
    %6 = arith.addf %3, %5 : vector<8x128xf32>
    %c0_5 = arith.constant 0 : index
    %c0_6 = arith.constant 0 : index
    %7 = vector.load %arg5[%c0_5, %c0_6] : memref<8x128xf32, #tpu.memory_space<vmem>>, vector<8x128xf32>
    tpu.vector_store %arg5[%c0_5, %c0_6], %6 {strides = array<i32>} : memref<8x128xf32, #tpu.memory_space<vmem>>, vector<8x128xf32>,
    return
  }
  func.func @transform_0(%arg0: i32, %arg1: i32) -> (i32, i32) {
    %c0_i32 = arith.constant 0 : i32
    return %arg0, %arg1 : i32, i32
  }
  func.func @transform_1(%arg0: i32, %arg1: i32) -> (i32, i32) {
    %c0_i32 = arith.constant 0 : i32
    %c0_i32_0 = arith.constant 0 : i32
    return %c0_i32, %arg1 : i32, i32
  }
  func.func @transform_2(%arg0: i32, %arg1: i32) -> (i32, i32) {
    %c0_i32 = arith.constant 0 : i32
    %c0_i32_0 = arith.constant 0 : i32
    return %c0_i32, %arg1 : i32, i32
  }
  func.func @transform_3(%arg0: i32, %arg1: i32) -> (i32, i32) {
    %c0_i32 = arith.constant 0 : i32
    return %arg0, %arg1 : i32, i32
  }
}

</mosaic_0001>

<bundles_post_ra>
// kernel: tpu_custom_call.1
= control target key start
LH: loop header
LB: loop body
LE: loop exit
PB: predicated region body
PF: predicated region fallthrough
CT: control target
= control target key end

     0   :  { %8 = vsyncpa [#allocation3], 0  ;;  %s719_s0 = inlined_call_operand.hbm [shape: f32[16,128], index: 0, kind: input, shape index: {}]   ;;  %s720_s1 = inlined_call_operand.vmem [shape: f32[1,128], index: 1, kind: input, shape index: {}]   ;;  %s721_s2 = inlined_call_operand.vmem [shape: f32[1,128], index: 2, kind: input, shape index: {}]   ;;  %s722_s3 = inlined_call_operand.hbm [shape: f32[16,128], index: 3, kind: output, shape index: {}]  }
   0x1   :  { %10 = vsyncpa [#allocation3 + $0x1], 0 }
   0x2   :  { %11 = vsyncpa [#allocation4], 0 }
   0x3   :  { %13 = vsyncpa [#allocation4 + $0x1], 0  ;;  %s579_s12 = smov 0   ;;  %s581_s13 = smov 0  }
   0x4   :  { %s583_s14 = smov 0   ;;  %s585_s15 = smov 0  }
   0x5   :  { %s587_s16 = smov 0   ;;  %s589_s17 = smov 0  }
   0x6 LB: > { %s368_s18 = sadd.s32 4294967295, %s555_s17   ;;  %s369_s19 = sadd.s32 4294967294, %s555_s17   ;;  %s555_s17 = sphi %s589_s17, %s19_s17   ;;  %s551_s16 = sphi %s587_s16, %s734_s16   ;;  %s547_s15 = sphi %s585_s15, %s733_s15   ;;  %s543_s14 = sphi %s583_s14, %s732_s14   ;;  %s539_s13 = sphi %s581_s13, %s731_s13   ;;  %s535_s12 = sphi %s579_s12, %s730_s12  }
   0x7   : > { %s31_s20 = sadd.s32 1, %s551_s16  ;;  %s40_s21 = sadd.s32 1, %s543_s14 }
   0x8   : > { %p33_p0 = scmp.ge.s32.totalorder %s31_s20, 2  ;;  %p47_p1 = scmp.ne.s32.totalorder %s543_s14, %s539_s13 }
   0x9   : > { %p48_p2 = scmp.eq.s32.totalorder %s555_s17, 0  ;;  %p53_p3 = scmp.ne.s32.totalorder %s539_s13, %s535_s12 }
   0xa   : > { %s736_s20 = smov (%p33_p0, %s31_s20), 0  ;;  %p54_p5 = scmp.eq.s32.totalorder %s368_s18, 0 }
   0xb   : > { %p620_p4 = por %p48_p2, %p47_p1  ;;  %s35_s23 = ssub.s32 %s551_s16, %s736_s20 }
   0xc   : > { %p131_p6 = scmp.eq.s32.totalorder %s368_s18, 1  ;;  %p38_p7 = scmp.eq.s32.totalorder %s35_s23, 0 }
   0xd   : > { %p626_p8 = por %p54_p5, %p53_p3  ;;  %p137_p10 = scmp.eq.s32.totalorder %s369_s19, 1 }
   0xe   : > { %p630_p9 = por %p131_p6, %p47_p1  ;;  %p397_p13 = scmp.lt.s32.totalorder %s555_s17, 2 }
   0xf   : > { %s635_s26 = scalar_select %p38_p7, %s543_s14, %s40_s21  }
  0x10   : > { %p637_p11 = por %p137_p10, %p53_p3  ;;  %s169_s28 = sand.u32 1, %s543_s14  }
  0x11   : > { %s374_s29 = sshll.u32 %s169_s28, 3  ;;  %s375_s30 = sshll.u32 %s551_s16, 7 }
  0x12   : > { %s726_s27 = scalar_select %p637_p11, 1, 0 }
  0x13   : > { %s179_s6 = scalar_lea.hbm %s719_s0, %s375_s30  ;;  %s173_s7 = scalar_lea.vmem [#allocation2], %s374_s29 }
  0x14   : > { %s181_s8 = sshll.u32 %s173_s7, 4  ;;  %p650_p0 = pnand %p397_p13, %p620_p4  ;;  %s182_s8 = int_to_ptr.vmem [resolvable:$true] %s181_s8 }
  0x15   : > { %p376_p1 = scmp.ge.s32.totalorder %s555_s17, 1  ;;  %p186_p2 = scmp.lt.s32.totalorder %s555_s17, 3 }
  0x16   : > { %s170_s10 = scalar_lea.sflag [#allocation3], %s169_s28  ;;  %p449_p3 = pneg %p650_p0 }
  0x17   : > { %s460_s11 = scalar_lea.vmem %s182_s8, 128  ;;  %s557_s18 = smov [#allocation2]  }
  0x18   : > { %p461_p5 = scmp.ne.s32.totalorder %s182_s8, %s460_s11  ;;  %s465_s19 = sshll.u32 %s557_s18, 4  ;;  %s466_s19 = int_to_ptr.vmem [resolvable:$false] %s465_s19 }
  0x19   : > { %s467_s21 = scalar_lea.vmem %s466_s19, 256  ;;  %p468_p10 = scmp.lt.s32.totalorder %s182_s8, %s466_s19 }
  0x1a   : > { %p463_p6 = pnand %p461_p5, %p449_p3  ;;  %p469_p12 = scmp.lt.s32.totalorder %s467_s21, %s460_s11 }
  0x1c   : > { %p464_p7 = pneg %p463_p6  ;;  %p470_p4 = por %p469_p12, %p468_p10 }
  0x1e   : > { %p471_p13 = pnand %p470_p4, %p464_p7 }
  0x20   : > { %474 = shalt.err (!%p471_p13)
}
  0x21   : > { %392 = dma.hbm_to_vmem [thread:$0]  (!%p650_p0), %s179_s6, 128, %s182_s8, %s170_s10  }
  0x22   : > { %p187_p11 = pnand %p376_p1, %p186_p2 }
  0x23   : > { %s665_s22 = sand.u32 (!%p187_p11), 1, %s539_s13  }
  0x24   : > { %190 = sbr.rel (%p187_p11) target bundleno = 66 (0x42), region = 32  ;;  %s377_s23 = sshll.u32 (!%p187_p11), %s665_s22, 3 }
  0x25   : > { %s193_s28 = scalar_lea.sflag (!%p187_p11), [#allocation3], %s665_s22  ;;  %s196_s29 = scalar_lea.vmem (!%p187_p11), [#allocation2], %s377_s23 }
  0x29   : > { %526 = dma.done.wait (%p626_p8), %s193_s28, 128  }
  0x2a   : > { %528 = vsyncadd (%p626_p8), %s193_s28, 4294967168  ;;  %s224_s30 = scalar_lea.vmem [#allocation5], %s377_s23  ;;  %v379_v0 = vld [vmem:[%s720_s1] ss:$0 sm:$0xff]  ;;  %s382_s9 = sshll.u32 %s547_s15, 7 }
  0x2b   : > { %s264_s4 = sshll.u32 %s224_s30, 4  ;;  %v232_v1 = vld [vmem:[%s196_s29] sm:$0xff]  ;;  %s262_s11 = scalar_lea.hbm %s722_s3, %s382_s9  ;;  %s265_s4 = int_to_ptr.vmem [resolvable:$true] %s264_s4 }
  0x2c   : > { %v380_v2 = vld [vmem:[%s721_s2] ss:$0 sm:$0xff]  ;;  %v239_v3 = vmul.f32 %v379_v0, %v232_v1  ;;  %s250_s18 = scalar_lea.sflag [#allocation4], %s665_s22  ;;  %s475_s19 = scalar_lea.vmem %s265_s4, 128 }
  0x2d   : > { %p476_p8 = scmp.ne.s32.totalorder %s265_s4, %s475_s19  ;;  %s558_s21 = smov [#allocation5]  }
  0x2e   : > { %v247_v4 = vadd.f32 %v380_v2, %v239_v3  ;;  %s479_s23 = sshll.u32 %s558_s21, 4  ;;  %s480_s23 = int_to_ptr.vmem [resolvable:$false] %s479_s23 }
  0x2f   : > { %p477_p11 = pnand %p476_p8, %p630_p9  ;;  %s481_s28 = scalar_lea.vmem %s480_s23, 256 }
  0x30   : > { %248 = vst [vmem:[%s224_s30] sm:$0xff] %v247_v4  ;;  %p482_p0 = scmp.lt.s32.totalorder %s265_s4, %s480_s23  ;;  %p483_p1 = scmp.lt.s32.totalorder %s481_s28, %s475_s19 }
  0x31   : > { %p478_p12 = pneg %p477_p11 }
  0x32   : > { %p484_p2 = por %p483_p1, %p482_p0 }
  0x34   : > { %p485_p3 = pnand %p484_p2, %p478_p12 }
  0x36   : > { %488 = shalt.err (!%p485_p3)
}
  0x37   : > { %s489_s15 = scalar_lea.hbm %s262_s11, 128  ;;  %s493_s30 = scalar_lea.hbm %s722_s3, 256 }
  0x38   : > { %p490_p5 = scmp.ne.s32.totalorder %s262_s11, %s489_s15  ;;  %p494_p10 = scmp.lt.s32.totalorder %s262_s11, %s722_s3 }
  0x39   : > { %p495_p4 = scmp.lt.s32.totalorder %s493_s30, %s489_s15 }
  0x3a   : > { %p491_p6 = pnand %p490_p5, %p630_p9 }
  0x3b   : > { %p496_p13 = por %p495_p4, %p494_p10 }
  0x3c   : > { %p492_p7 = pneg %p491_p6 }
  0x3e   : > { %p497_p8 = pnand %p496_p13, %p492_p7 }
  0x40   : > { %500 = shalt.err (!%p497_p8)
}
  0x41   : > { %387 = dma.vmem_to_hbm [thread:$0]  (%p630_p9), %s265_s4, 128, %s262_s11, %s250_s18  }
  0x42 PF: > { %s276_s7 = sand.u32 1, %s535_s12   ;;  %p728_p11 = scmp.ne.s32.totalorder %s726_s27, 0 }
  0x43   : > { %p729_p12 = scmp.ge.s32.totalorder %s555_s17, 2  ;;  %s277_s8 = scalar_lea.sflag [#allocation4], %s276_s7 }
  0x45   : > { %p394_p0 = pnand %p729_p12, %p728_p11 }
  0x47   : > { %p395_p1 = pneg %p394_p0 }
  0x49   : > { %530 = dma.done.wait (%p395_p1), %s277_s8, 128  }
  0x4a   : > { %532 = vsyncadd (%p395_p1), %s277_s8, 4294967168  ;;  %s19_s17 = sadd.s32 1, %s555_s17   ;;  %s730_s12 = smov %s539_s13 }
  0x4b   : > { %p16_p2 = scmp.ge.s32.totalorder %s19_s17, 4   ;;  %s731_s13 = smov %s543_s14 }
  0x4c   : > { %s732_s14 = smov %s635_s26  ;;  %s733_s15 = smov %s551_s16 }
  0x4d   : > { %s734_s16 = smov %s736_s20  ;;  %18 = sbr.rel (!%p16_p2) target bundleno = 6 (0x6), region = 83 }
  0x52   :  { %282 = vsyncpa [#allocation3], 1 }
  0x53   :  { %284 = vsyncpa [#allocation3 + $0x1], 1 }
  0x54   :  { %285 = vsyncpa [#allocation4], 1 }
  0x55   :  { %287 = vsyncpa [#allocation4 + $0x1], 1 }

</bundles_post_ra>
